<compile_context>
chip_gen: v7x
topology: tpu7x:2x2x1
jax: 0.10.0
libtpu: 0.0.40
codegen_flags: <defaults>
</compile_context>

<pallas_src>
import jax
import jax.numpy as jnp
from jax.experimental import pallas as pl
from jax.experimental.pallas import tpu as pltpu


def _linear_kernel(x_ref, w_ref, b_ref, o_ref):
    """o = x @ w + b  — single block, single MXU matmul, fused bias."""
    acc = jnp.dot(x_ref[...], w_ref[...], preferred_element_type=jnp.float32)
    o_ref[...] = (acc + b_ref[...]).astype(o_ref.dtype)


def deepfake_classifier_forward(x, weight, bias):
    """Pallas forward of DeepfakeClassifier: y = x @ weight.T + bias.

    x:      (B, K) float32
    weight: (out_dim, K) float32  (PyTorch nn.Linear layout, out_dim=2)
    bias:   (out_dim,)   float32
    """
    B, K = x.shape
    out_dim, k2 = weight.shape
    assert k2 == K, f"weight K mismatch: {k2} vs {K}"

    w_t = jnp.transpose(weight)          # (K, out_dim) for the matmul
    b2d = bias.reshape(1, out_dim)       # broadcastable bias row

    vmem = pltpu.MemorySpace.VMEM
    return pl.pallas_call(
        _linear_kernel,
        out_shape=jax.ShapeDtypeStruct((B, out_dim), x.dtype),
        in_specs=[
            pl.BlockSpec(memory_space=vmem),   # x    (B, K)
            pl.BlockSpec(memory_space=vmem),   # W^T  (K, out_dim)
            pl.BlockSpec(memory_space=vmem),   # bias (1, out_dim)
        ],
        out_specs=pl.BlockSpec(memory_space=vmem),
    )(x, w_t, b2d)


if __name__ == "__main__":
    key = jax.random.PRNGKey(0)
    kx, kw, kb = jax.random.split(key, 3)

    batch = 8
    input_size = 2048  # matches the module default

    x = jax.random.normal(kx, (batch, input_size), dtype=jnp.float32)
    # Deterministic synthetic parameters with nn.Linear(input_size, 2) shapes.
    bound = 1.0 / jnp.sqrt(input_size)
    weight = jax.random.uniform(
        kw, (2, input_size), dtype=jnp.float32, minval=-bound, maxval=bound
    )
    bias = jax.random.uniform(
        kb, (2,), dtype=jnp.float32, minval=-bound, maxval=bound
    )

    y = deepfake_classifier_forward(x, weight, bias)
    y = jax.block_until_ready(y)

    # Reference check in plain JAX.
    y_ref = x @ weight.T + bias
    assert y.shape == (batch, 2)
    assert jnp.allclose(y, y_ref, atol=1e-4, rtol=1e-4)

    print("KERNEL_OK")
</pallas_src>

<mosaic_0001>
module attributes {stable_mosaic.version = 11 : i64} {
  func.func @_linear_kernel(%arg0: memref<8x2048xf32, #tpu.memory_space<vmem>>, %arg1: memref<2048x2xf32, #tpu.memory_space<vmem>>, %arg2: memref<1x2xf32, #tpu.memory_space<vmem>>, %arg3: memref<8x2xf32, #tpu.memory_space<vmem>>) attributes {dimension_semantics = [], scalar_prefetch = 0 : i64, scratch_operands = 0 : i64, tpu.core_type = #tpu.core_type<tc>} {
    %c0 = arith.constant 0 : index
    %c0_0 = arith.constant 0 : index
    %0 = vector.load %arg0[%c0, %c0_0] : memref<8x2048xf32, #tpu.memory_space<vmem>>, vector<8x2048xf32>
    %c0_1 = arith.constant 0 : index
    %c0_2 = arith.constant 0 : index
    %1 = vector.load %arg1[%c0_1, %c0_2] : memref<2048x2xf32, #tpu.memory_space<vmem>>, vector<2048x2xf32>
    %cst = arith.constant dense<0.000000e+00> : vector<8x2xf32>
    %2 = tpu.matmul %0, %1, %cst {dimension_numbers = #tpu.dot_dimension_numbers<[1], [0], [0], [1], [0, 0, 1, 1], [], []>} : vector<8x2048xf32>, vector<2048x2xf32>, vector<8x2xf32> -> vector<8x2xf32>
    %c0_3 = arith.constant 0 : index
    %c0_4 = arith.constant 0 : index
    %3 = vector.load %arg2[%c0_3, %c0_4] : memref<1x2xf32, #tpu.memory_space<vmem>>, vector<1x2xf32>
    %4 = vector.broadcast %3 : vector<1x2xf32> to vector<8x2xf32>
    %5 = arith.addf %2, %4 : vector<8x2xf32>
    %c0_5 = arith.constant 0 : index
    %c0_6 = arith.constant 0 : index
    %6 = vector.load %arg3[%c0_5, %c0_6] : memref<8x2xf32, #tpu.memory_space<vmem>>, vector<8x2xf32>
    tpu.vector_store %arg3[%c0_5, %c0_6], %5 {strides = array<i32>} : memref<8x2xf32, #tpu.memory_space<vmem>>, vector<8x2xf32>,
    return
  }
}

</mosaic_0001>

<bundles_post_ra>
// kernel: tpu_custom_call.1
= control target key start
LH: loop header
LB: loop body
LE: loop exit
PB: predicated region body
PF: predicated region fallthrough
CT: control target
= control target key end

     0   :  { %vm853_vm0 = vcmask 15360   ;;  %s2238_s1 = inlined_call_operand.vmem [shape: f32[2048,2], index: 1, kind: input, shape index: {}]   ;;  %s2239_s0 = inlined_call_operand.vmem [shape: f32[8,2048], index: 0, kind: input, shape index: {}]   ;;  %s2240_s2 = inlined_call_operand.vmem [shape: f32[1,2], index: 2, kind: input, shape index: {}]   ;;  %s2241_s3 = inlined_call_operand.vmem [shape: f32[8,2], index: 3, kind: output, shape index: {}]  }
   0x1   :  { %v46_v0 = vld [vmem:[%s2238_s1 + $0x80] sm:$0xff]  ;;  %v47_v1 = vld [vmem:[%s2238_s1 + $0x88] sm:$0xff]  ;;  %v48_v11 = vld [vmem:[%s2238_s1 + $0x90] sm:$0xff] }
   0x2   :  { %v30_v2 = vld [vmem:[%s2238_s1] sm:$0xff]  ;;  %v1140_v3 = vpack.c.bf16 %v47_v1, %v46_v0  ;;  %v31_v4 = vld [vmem:[%s2238_s1 + $0x8] sm:$0xff]  ;;  %v49_v13 = vld [vmem:[%s2238_s1 + $0x98] sm:$0xff] }
   0x3   :  { %v78_v5 = vld [vmem:[%s2238_s1 + $0x180] sm:$0xff]  ;;  %v79_v6 = vld [vmem:[%s2238_s1 + $0x188] sm:$0xff]  ;;  %v1142_v7 = vpack.c.bf16 %v31_v4, %v30_v2  ;;  %v32_v14 = vld [vmem:[%s2238_s1 + $0x10] sm:$0xff]  ;;  %v1144_v16 = vpack.c.bf16 %v49_v13, %v48_v11 }
   0x4   :  { %v1172_v8 = vpack.c.bf16 %v79_v6, %v78_v5  ;;  %v62_v9 = vld [vmem:[%s2238_s1 + $0x100] sm:$0xff]  ;;  %v63_v10 = vld [vmem:[%s2238_s1 + $0x108] sm:$0xff]  ;;  %1141 = vmatprep.subr.bf16.mxu0 %v1140_v3  ;;  %v33_v15 = vld [vmem:[%s2238_s1 + $0x18] sm:$0xff] }
   0x5   :  { %v1174_v12 = vpack.c.bf16 %v63_v10, %v62_v9  ;;  %1143 = vmatpush3.bf16.msra.mxu0 %v1142_v7  ;;  %v1146_v17 = vpack.c.bf16 %v33_v15, %v32_v14  ;;  %v80_v18 = vld [vmem:[%s2238_s1 + $0x190] sm:$0xff]  ;;  %v81_v19 = vld [vmem:[%s2238_s1 + $0x198] sm:$0xff]  ;;  %v50_v23 = vld [vmem:[%s2238_s1 + $0xa0] sm:$0xff] }
   0x6   :  { %1173 = vmatprep.subr.bf16.mxu1 %v1172_v8  ;;  %v64_v20 = vld [vmem:[%s2238_s1 + $0x110] sm:$0xff]  ;;  %v1176_v21 = vpack.c.bf16 %v81_v19, %v80_v18  ;;  %v65_v22 = vld [vmem:[%s2238_s1 + $0x118] sm:$0xff]  ;;  %v51_v24 = vld [vmem:[%s2238_s1 + $0xa8] sm:$0xff]  ;;  %1145 = vmatprep.subr.bf16.mxu0 %v1144_v16 }
   0x7   :  { %1175 = vmatpush3.bf16.msra.mxu1 %v1174_v12  ;;  %v1178_v25 = vpack.c.bf16 %v65_v22, %v64_v20  ;;  %v1148_v26 = vpack.c.bf16 %v51_v24, %v50_v23  ;;  %v34_v27 = vld [vmem:[%s2238_s1 + $0x20] sm:$0xff]  ;;  %v35_v28 = vld [vmem:[%s2238_s1 + $0x28] sm:$0xff]  ;;  %v52_v35 = vld [vmem:[%s2238_s1 + $0xb0] sm:$0xff] }
   0x8   :  { %v82_v29 = vld [vmem:[%s2238_s1 + $0x1a0] sm:$0xff]  ;;  %1177 = vmatprep.subr.bf16.mxu1 %v1176_v21  ;;  %v83_v30 = vld [vmem:[%s2238_s1 + $0x1a8] sm:$0xff]  ;;  %v1150_v33 = vpack.c.bf16 %v35_v28, %v34_v27  ;;  %v53_v36 = vld [vmem:[%s2238_s1 + $0xb8] sm:$0xff] }
   0x9   :  { %v66_v31 = vld [vmem:[%s2238_s1 + $0x120] sm:$0xff]  ;;  %v67_v32 = vld [vmem:[%s2238_s1 + $0x128] sm:$0xff]  ;;  %1147 = vmatpush3.bf16.msra.mxu0 %v1146_v17  ;;  %v1180_v34 = vpack.c.bf16 %v83_v30, %v82_v29  ;;  %v36_v37 = vld [vmem:[%s2238_s1 + $0x30] sm:$0xff]  ;;  %v1152_v39 = vpack.c.bf16 %v53_v36, %v52_v35 }
   0xa   :  { %1149 = vmatprep.subr.bf16.mxu0 %v1148_v26  ;;  %v1182_v38 = vpack.c.bf16 %v67_v32, %v66_v31  ;;  %v37_v40 = vld [vmem:[%s2238_s1 + $0x38] sm:$0xff]  ;;  %v84_v41 = vld [vmem:[%s2238_s1 + $0x1b0] sm:$0xff]  ;;  %v54_v46 = vld [vmem:[%s2238_s1 + $0xc0] sm:$0xff] }
   0xb   :  { %1179 = vmatpush3.bf16.msra.mxu1 %v1178_v25  ;;  %v85_v42 = vld [vmem:[%s2238_s1 + $0x1b8] sm:$0xff]  ;;  %v68_v44 = vld [vmem:[%s2238_s1 + $0x130] sm:$0xff]  ;;  %v55_v47 = vld [vmem:[%s2238_s1 + $0xc8] sm:$0xff]  ;;  %v1154_v48 = vpack.c.bf16 %v37_v40, %v36_v37 }
   0xc   :  { %1181 = vmatprep.subr.bf16.mxu1 %v1180_v34  ;;  %v1184_v43 = vpack.c.bf16 %v85_v42, %v84_v41  ;;  %v69_v45 = vld [vmem:[%s2238_s1 + $0x138] sm:$0xff]  ;;  %v86_v49 = vld [vmem:[%s2238_s1 + $0x1c0] sm:$0xff]  ;;  %v87_v50 = vld [vmem:[%s2238_s1 + $0x1c8] sm:$0xff]  ;;  %v1156_v52 = vpack.c.bf16 %v55_v47, %v54_v46 }
   0xd   :  { %1151 = vmatpush3.bf16.msra.mxu0 %v1150_v33  ;;  %v1186_v51 = vpack.c.bf16 %v69_v45, %v68_v44  ;;  %v38_v53 = vld [vmem:[%s2238_s1 + $0x40] sm:$0xff]  ;;  %v39_v54 = vld [vmem:[%s2238_s1 + $0x48] sm:$0xff]  ;;  %v1188_v56 = vpack.c.bf16 %v87_v50, %v86_v49  ;;  %v56_v58 = vld [vmem:[%s2238_s1 + $0xd0] sm:$0xff] }
   0xe   :  { %1153 = vmatprep.subr.bf16.mxu0 %v1152_v39  ;;  %v70_v55 = vld [vmem:[%s2238_s1 + $0x140] sm:$0xff]  ;;  %v71_v57 = vld [vmem:[%s2238_s1 + $0x148] sm:$0xff]  ;;  %v57_v59 = vld [vmem:[%s2238_s1 + $0xd8] sm:$0xff]  ;;  %v1158_v62 = vpack.c.bf16 %v39_v54, %v38_v53 }
   0xf   :  { %1183 = vmatpush3.bf16.msra.mxu1 %v1182_v38  ;;  %v88_v60 = vld [vmem:[%s2238_s1 + $0x1d0] sm:$0xff]  ;;  %v89_v61 = vld [vmem:[%s2238_s1 + $0x1d8] sm:$0xff]  ;;  %v1190_v63 = vpack.c.bf16 %v71_v57, %v70_v55  ;;  %v1160_v0 = vpack.c.bf16 %v57_v59, %v56_v58  ;;  %v58_v6 = vld [vmem:[%s2238_s1 + $0xe0] sm:$0xff] }
  0x10   :  { %1185 = vmatprep.subr.bf16.mxu1 %v1184_v43  ;;  %v40_v1 = vld [vmem:[%s2238_s1 + $0x50] sm:$0xff]  ;;  %v41_v2 = vld [vmem:[%s2238_s1 + $0x58] sm:$0xff]  ;;  %v1192_v4 = vpack.c.bf16 %v89_v61, %v88_v60  ;;  %v59_v7 = vld [vmem:[%s2238_s1 + $0xe8] sm:$0xff] }
  0x11   :  { %1155 = vmatpush3.bf16.msra.mxu0 %v1154_v48  ;;  %v72_v3 = vld [vmem:[%s2238_s1 + $0x150] sm:$0xff]  ;;  %v73_v5 = vld [vmem:[%s2238_s1 + $0x158] sm:$0xff]  ;;  %v90_v8 = vld [vmem:[%s2238_s1 + $0x1e0] sm:$0xff]  ;;  %v1162_v10 = vpack.c.bf16 %v41_v2, %v40_v1  ;;  %v1164_v14 = vpack.c.bf16 %v59_v7, %v58_v6 }
  0x12   :  { %1157 = vmatprep.subr.bf16.mxu0 %v1156_v52  ;;  %v91_v9 = vld [vmem:[%s2238_s1 + $0x1e8] sm:$0xff]  ;;  %v42_v11 = vld [vmem:[%s2238_s1 + $0x60] sm:$0xff]  ;;  %v1194_v13 = vpack.c.bf16 %v73_v5, %v72_v3  ;;  %v60_v19 = vld [vmem:[%s2238_s1 + $0xf0] sm:$0xff] }
  0x13   :  { %1187 = vmatpush3.bf16.msra.mxu1 %v1186_v51  ;;  %v43_v12 = vld [vmem:[%s2238_s1 + $0x68] sm:$0xff]  ;;  %v74_v15 = vld [vmem:[%s2238_s1 + $0x160] sm:$0xff]  ;;  %v1196_v18 = vpack.c.bf16 %v91_v9, %v90_v8  ;;  %v61_v20 = vld [vmem:[%s2238_s1 + $0xf8] sm:$0xff] }
  0x14   :  { %1189 = vmatprep.subr.bf16.mxu1 %v1188_v56  ;;  %v75_v16 = vld [vmem:[%s2238_s1 + $0x168] sm:$0xff]  ;;  %v17_v21 = vld [vmem:[%s2239_s0 + $0x18] sm:$0xff]  ;;  %v92_v22 = vld [vmem:[%s2238_s1 + $0x1f0] sm:$0xff]  ;;  %v1166_v24 = vpack.c.bf16 %v43_v12, %v42_v11  ;;  %v1168_v26 = vpack.c.bf16 %v61_v20, %v60_v19 }
  0x15   :  { %1159 = vmatpush3.bf16.msra.mxu0 %v1158_v62  ;;  %v15_v17 = vld [vmem:[%s2239_s0 + $0x8] sm:$0xff]  ;;  %v93_v23 = vld [vmem:[%s2238_s1 + $0x1f8] sm:$0xff]  ;;  %427 = vmatprep.mubr.f32.mxu1 %v17_v21  ;;  %v1198_v25 = vpack.c.bf16 %v75_v16, %v74_v15  ;;  %v44_v27 = vld [vmem:[%s2238_s1 + $0x70] sm:$0xff] }
  0x16   :  { %1161 = vmatprep.subr.bf16.mxu0 %v1160_v0  ;;  %357 = vmatprep.mubr.f32.mxu0 %v15_v17  ;;  %v45_v28 = vld [vmem:[%s2238_s1 + $0x78] sm:$0xff]  ;;  %v76_v29 = vld [vmem:[%s2238_s1 + $0x170] sm:$0xff]  ;;  %v1200_v30 = vpack.c.bf16 %v93_v23, %v92_v22  ;;  %v110_v32 = vld [vmem:[%s2238_s1 + $0x280] sm:$0xff] }
  0x17   :  { %1191 = vmatpush3.bf16.msra.mxu1 %v1190_v63  ;;  %v77_v31 = vld [vmem:[%s2238_s1 + $0x178] sm:$0xff]  ;;  %v111_v33 = vld [vmem:[%s2238_s1 + $0x288] sm:$0xff]  ;;  %v142_v34 = vld [vmem:[%s2238_s1 + $0x380] sm:$0xff]  ;;  %v1170_v36 = vpack.c.bf16 %v45_v28, %v44_v27 }
  0x18   :  { %1193 = vmatprep.subr.bf16.mxu1 %v1192_v4  ;;  %v143_v35 = vld [vmem:[%s2238_s1 + $0x388] sm:$0xff]  ;;  %v1202_v37 = vpack.c.bf16 %v77_v31, %v76_v29  ;;  %v1204_v38 = vpack.c.bf16 %v111_v33, %v110_v32  ;;  %v94_v39 = vld [vmem:[%s2238_s1 + $0x200] sm:$0xff]  ;;  %v112_v44 = vld [vmem:[%s2238_s1 + $0x290] sm:$0xff] }
  0x19   :  { %1163 = vmatpush3.bf16.msra.mxu0 %v1162_v10  ;;  %v95_v40 = vld [vmem:[%s2238_s1 + $0x208] sm:$0xff]  ;;  %v126_v41 = vld [vmem:[%s2238_s1 + $0x300] sm:$0xff]  ;;  %v1236_v42 = vpack.c.bf16 %v143_v35, %v142_v34  ;;  %v113_v45 = vld [vmem:[%s2238_s1 + $0x298] sm:$0xff] }
  0x1a   :  { %1165 = vmatprep.subr.bf16.mxu0 %v1164_v14  ;;  %v127_v43 = vld [vmem:[%s2238_s1 + $0x308] sm:$0xff]  ;;  %v144_v46 = vld [vmem:[%s2238_s1 + $0x390] sm:$0xff]  ;;  %v145_v47 = vld [vmem:[%s2238_s1 + $0x398] sm:$0xff]  ;;  %v1206_v49 = vpack.c.bf16 %v95_v40, %v94_v39  ;;  %v1208_v52 = vpack.c.bf16 %v113_v45, %v112_v44 }
  0x1b   :  { %1195 = vmatpush3.bf16.msra.mxu1 %v1194_v13  ;;  %v14_v48 = vld [vmem:[%s2239_s0] sm:$0xff]  ;;  %v16_v50 = vld [vmem:[%s2239_s0 + $0x10] sm:$0xff]  ;;  %v1238_v51 = vpack.c.bf16 %v127_v43, %v126_v41  ;;  %v97_v54 = vld [vmem:[%s2238_s1 + $0x218] sm:$0xff]  ;;  %v1240_v56 = vpack.c.bf16 %v145_v47, %v144_v46 }
  0x1c   :  { %1197 = vmatprep.subr.bf16.mxu1 %v1196_v18  ;;  %v96_v53 = vld [vmem:[%s2238_s1 + $0x210] sm:$0xff]  ;;  %v129_v57 = vld [vmem:[%s2238_s1 + $0x318] sm:$0xff]  ;;  %v114_v58 = vld [vmem:[%s2238_s1 + $0x2a0] sm:$0xff] }
  0x1d   :  { %1167 = vmatpush3.bf16.msra.mxu0 %v1166_v24  ;;  %v128_v55 = vld [vmem:[%s2238_s1 + $0x310] sm:$0xff]  ;;  %v115_v59 = vld [vmem:[%s2238_s1 + $0x2a8] sm:$0xff]  ;;  %v146_v60 = vld [vmem:[%s2238_s1 + $0x3a0] sm:$0xff]  ;;  %v1210_v62 = vpack.c.bf16 %v97_v54, %v96_v53 }
  0x1e   :  { %1169 = vmatprep.subr.bf16.mxu0 %v1168_v26  ;;  %v147_v61 = vld [vmem:[%s2238_s1 + $0x3a8] sm:$0xff]  ;;  %v1242_v63 = vpack.c.bf16 %v129_v57, %v128_v55  ;;  %v1212_v0 = vpack.c.bf16 %v115_v59, %v114_v58  ;;  %v98_v1 = vld [vmem:[%s2238_s1 + $0x220] sm:$0xff]  ;;  %v116_v6 = vld [vmem:[%s2238_s1 + $0x2b0] sm:$0xff] }
  0x1f   :  { %1199 = vmatpush3.bf16.msra.mxu1 %v1198_v25  ;;  %v99_v2 = vld [vmem:[%s2238_s1 + $0x228] sm:$0xff]  ;;  %v130_v3 = vld [vmem:[%s2238_s1 + $0x320] sm:$0xff]  ;;  %v1244_v4 = vpack.c.bf16 %v147_v61, %v146_v60  ;;  %v117_v7 = vld [vmem:[%s2238_s1 + $0x2b8] sm:$0xff] }
  0x20   :  { %1201 = vmatprep.subr.bf16.mxu1 %v1200_v30  ;;  %v131_v5 = vld [vmem:[%s2238_s1 + $0x328] sm:$0xff]  ;;  %v148_v8 = vld [vmem:[%s2238_s1 + $0x3b0] sm:$0xff]  ;;  %v149_v9 = vld [vmem:[%s2238_s1 + $0x3b8] sm:$0xff]  ;;  %v1214_v10 = vpack.c.bf16 %v99_v2, %v98_v1  ;;  %v1216_v12 = vpack.c.bf16 %v117_v7, %v116_v6 }
  0x21   :  { %1171 = vmatpush3.bf16.msra.mxu0 %v1170_v36  ;;  %v1246_v11 = vpack.c.bf16 %v131_v5, %v130_v3  ;;  %v100_v13 = vld [vmem:[%s2238_s1 + $0x230] sm:$0xff]  ;;  %v101_v14 = vld [vmem:[%s2238_s1 + $0x238] sm:$0xff]  ;;  %v1248_v16 = vpack.c.bf16 %v149_v9, %v148_v8  ;;  %v118_v18 = vld [vmem:[%s2238_s1 + $0x2c0] sm:$0xff] }
  0x22   :  { %1205 = vmatprep.subr.bf16.mxu0 %v1204_v38  ;;  %v132_v15 = vld [vmem:[%s2238_s1 + $0x330] sm:$0xff]  ;;  %v133_v17 = vld [vmem:[%s2238_s1 + $0x338] sm:$0xff]  ;;  %v119_v19 = vld [vmem:[%s2238_s1 + $0x2c8] sm:$0xff]  ;;  %v1218_v22 = vpack.c.bf16 %v101_v14, %v100_v13 }
  0x23   :  { %1203 = vmatpush3.bf16.msra.mxu1 %v1202_v37  ;;  %v150_v20 = vld [vmem:[%s2238_s1 + $0x3c0] sm:$0xff]  ;;  %v151_v21 = vld [vmem:[%s2238_s1 + $0x3c8] sm:$0xff]  ;;  %v1250_v25 = vpack.c.bf16 %v133_v17, %v132_v15  ;;  %v1220_v26 = vpack.c.bf16 %v119_v19, %v118_v18  ;;  %v21_v29 = vld [vmem:[%s2239_s0 + $0x38] sm:$0xff] }
  0x24   :  { %1237 = vmatprep.subr.bf16.mxu1 %v1236_v42  ;;  %358 = vmatmul.mubr.f32.vlgmr.msra.gmra.mrb[0].mxu0 %v14_v48  ;;  %v102_v23 = vld [vmem:[%s2238_s1 + $0x240] sm:$0xff]  ;;  %v19_v24 = vld [vmem:[%s2239_s0 + $0x28] sm:$0xff]  ;;  %v1252_v30 = vpack.c.bf16 %v151_v21, %v150_v20  ;;  %v120_v32 = vld [vmem:[%s2238_s1 + $0x2d0] sm:$0xff] }
  0x25   :  { %1207 = vmatpush3.bf16.msra.mxu0 %v1206_v49  ;;  %v103_v27 = vld [vmem:[%s2238_s1 + $0x248] sm:$0xff]  ;;  %v134_v28 = vld [vmem:[%s2238_s1 + $0x340] sm:$0xff]  ;;  %v121_v33 = vld [vmem:[%s2238_s1 + $0x2d8] sm:$0xff]  ;;  %497 = vmatprep.mubr.f32.mxu0 %v19_v24 }
  0x26   :  { %428 = vmatmul.mubr.f32.vlgmr.msra.gmra.mrb[0].mxu1 %v16_v50  ;;  %1209 = vmatprep.subr.bf16.mxu0 %v1208_v52  ;;  %v135_v31 = vld [vmem:[%s2238_s1 + $0x348] sm:$0xff]  ;;  %v152_v34 = vld [vmem:[%s2238_s1 + $0x3d0] sm:$0xff]  ;;  %v153_v35 = vld [vmem:[%s2238_s1 + $0x3d8] sm:$0xff]  ;;  %v1222_v36 = vpack.c.bf16 %v103_v27, %v102_v23  ;;  %v1224_v38 = vpack.c.bf16 %v121_v33, %v120_v32 }
  0x27   :  { %1239 = vmatpush3.bf16.msra.mxu1 %v1238_v51  ;;  %567 = vmatprep.mubr.f32.mxu1 %v21_v29  ;;  %v1254_v37 = vpack.c.bf16 %v135_v31, %v134_v28  ;;  %v104_v39 = vld [vmem:[%s2238_s1 + $0x250] sm:$0xff]  ;;  %v105_v40 = vld [vmem:[%s2238_s1 + $0x258] sm:$0xff]  ;;  %v1256_v42 = vpack.c.bf16 %v153_v35, %v152_v34  ;;  %v122_v44 = vld [vmem:[%s2238_s1 + $0x2e0] sm:$0xff] }
  0x28   :  { %1241 = vmatprep.subr.bf16.mxu1 %v1240_v56  ;;  %v136_v41 = vld [vmem:[%s2238_s1 + $0x350] sm:$0xff]  ;;  %v137_v43 = vld [vmem:[%s2238_s1 + $0x358] sm:$0xff]  ;;  %v123_v45 = vld [vmem:[%s2238_s1 + $0x2e8] sm:$0xff]  ;;  %v1226_v48 = vpack.c.bf16 %v105_v40, %v104_v39 }
  0x29   :  { %1211 = vmatpush3.bf16.msra.mxu0 %v1210_v62  ;;  %v154_v46 = vld [vmem:[%s2238_s1 + $0x3e0] sm:$0xff]  ;;  %v155_v47 = vld [vmem:[%s2238_s1 + $0x3e8] sm:$0xff]  ;;  %v1258_v49 = vpack.c.bf16 %v137_v43, %v136_v41  ;;  %v1228_v50 = vpack.c.bf16 %v123_v45, %v122_v44  ;;  %v124_v56 = vld [vmem:[%s2238_s1 + $0x2f0] sm:$0xff] }
  0x2a   :  { %1213 = vmatprep.subr.bf16.mxu0 %v1212_v0  ;;  %v106_v51 = vld [vmem:[%s2238_s1 + $0x260] sm:$0xff]  ;;  %v107_v52 = vld [vmem:[%s2238_s1 + $0x268] sm:$0xff]  ;;  %v1260_v54 = vpack.c.bf16 %v155_v47, %v154_v46  ;;  %v125_v57 = vld [vmem:[%s2238_s1 + $0x2f8] sm:$0xff] }
  0x2b   :  { %1243 = vmatpush3.bf16.msra.mxu1 %v1242_v63  ;;  %v138_v53 = vld [vmem:[%s2238_s1 + $0x360] sm:$0xff]  ;;  %v139_v55 = vld [vmem:[%s2238_s1 + $0x368] sm:$0xff]  ;;  %v156_v58 = vld [vmem:[%s2238_s1 + $0x3f0] sm:$0xff]  ;;  %v1230_v60 = vpack.c.bf16 %v107_v52, %v106_v51  ;;  %v1232_v62 = vpack.c.bf16 %v125_v57, %v124_v56 }
  0x2c   :  { %1245 = vmatprep.subr.bf16.mxu1 %v1244_v4  ;;  %v157_v59 = vld [vmem:[%s2238_s1 + $0x3f8] sm:$0xff]  ;;  %v1262_v61 = vpack.c.bf16 %v139_v55, %v138_v53  ;;  %v108_v63 = vld [vmem:[%s2238_s1 + $0x270] sm:$0xff]  ;;  %v174_v4 = vld [vmem:[%s2238_s1 + $0x480] sm:$0xff] }
  0x2d   :  { %1215 = vmatpush3.bf16.msra.mxu0 %v1214_v10  ;;  %v109_v0 = vld [vmem:[%s2238_s1 + $0x278] sm:$0xff]  ;;  %v140_v1 = vld [vmem:[%s2238_s1 + $0x370] sm:$0xff]  ;;  %v1264_v2 = vpack.c.bf16 %v157_v59, %v156_v58  ;;  %v175_v5 = vld [vmem:[%s2238_s1 + $0x488] sm:$0xff] }
  0x2e   :  { %1217 = vmatprep.subr.bf16.mxu0 %v1216_v12  ;;  %v141_v3 = vld [vmem:[%s2238_s1 + $0x378] sm:$0xff]  ;;  %v206_v6 = vld [vmem:[%s2238_s1 + $0x580] sm:$0xff]  ;;  %v207_v7 = vld [vmem:[%s2238_s1 + $0x588] sm:$0xff]  ;;  %v1234_v8 = vpack.c.bf16 %v109_v0, %v108_v63  ;;  %v1268_v10 = vpack.c.bf16 %v175_v5, %v174_v4 }
  0x2f   :  { %1247 = vmatpush3.bf16.msra.mxu1 %v1246_v11  ;;  %v1266_v9 = vpack.c.bf16 %v141_v3, %v140_v1  ;;  %v158_v11 = vld [vmem:[%s2238_s1 + $0x400] sm:$0xff]  ;;  %v159_v12 = vld [vmem:[%s2238_s1 + $0x408] sm:$0xff]  ;;  %v1300_v14 = vpack.c.bf16 %v207_v7, %v206_v6  ;;  %v177_v17 = vld [vmem:[%s2238_s1 + $0x498] sm:$0xff] }
  0x30   :  { %1249 = vmatprep.subr.bf16.mxu1 %v1248_v16  ;;  %v190_v13 = vld [vmem:[%s2238_s1 + $0x500] sm:$0xff]  ;;  %v191_v15 = vld [vmem:[%s2238_s1 + $0x508] sm:$0xff]  ;;  %v176_v16 = vld [vmem:[%s2238_s1 + $0x490] sm:$0xff]  ;;  %v1270_v21 = vpack.c.bf16 %v159_v12, %v158_v11 }
  0x31   :  { %1219 = vmatpush3.bf16.msra.mxu0 %v1218_v22  ;;  %v208_v18 = vld [vmem:[%s2238_s1 + $0x590] sm:$0xff]  ;;  %v209_v19 = vld [vmem:[%s2238_s1 + $0x598] sm:$0xff]  ;;  %v18_v20 = vld [vmem:[%s2239_s0 + $0x20] sm:$0xff]  ;;  %v1302_v23 = vpack.c.bf16 %v191_v15, %v190_v13  ;;  %v1272_v24 = vpack.c.bf16 %v177_v17, %v176_v16 }
  0x32   :  { %1221 = vmatprep.subr.bf16.mxu0 %v1220_v26  ;;  %v20_v22 = vld [vmem:[%s2239_s0 + $0x30] sm:$0xff]  ;;  %v161_v26 = vld [vmem:[%s2238_s1 + $0x418] sm:$0xff]  ;;  %v1304_v28 = vpack.c.bf16 %v209_v19, %v208_v18  ;;  %v179_v31 = vld [vmem:[%s2238_s1 + $0x4a8] sm:$0xff] }
  0x33   :  { %1251 = vmatpush3.bf16.msra.mxu1 %v1250_v25  ;;  %v160_v25 = vld [vmem:[%s2238_s1 + $0x410] sm:$0xff]  ;;  %v193_v29 = vld [vmem:[%s2238_s1 + $0x518] sm:$0xff]  ;;  %v210_v32 = vld [vmem:[%s2238_s1 + $0x5a0] sm:$0xff] }
  0x34   :  { %1253 = vmatprep.subr.bf16.mxu1 %v1252_v30  ;;  %v192_v27 = vld [vmem:[%s2238_s1 + $0x510] sm:$0xff]  ;;  %v178_v30 = vld [vmem:[%s2238_s1 + $0x4a0] sm:$0xff]  ;;  %v211_v33 = vld [vmem:[%s2238_s1 + $0x5a8] sm:$0xff]  ;;  %v1274_v35 = vpack.c.bf16 %v161_v26, %v160_v25 }
  0x35   :  { %1223 = vmatpush3.bf16.msra.mxu0 %v1222_v36  ;;  %v23_v34 = vld [vmem:[%s2239_s0 + $0x48] sm:$0xff]  ;;  %v25_v36 = vld [vmem:[%s2239_s0 + $0x58] sm:$0xff]  ;;  %v162_v39 = vld [vmem:[%s2238_s1 + $0x420] sm:$0xff] }
  0x36   :  { %1225 = vmatprep.subr.bf16.mxu0 %v1224_v38  ;;  %v1276_v38 = vpack.c.bf16 %v179_v31, %v178_v30  ;;  %v163_v40 = vld [vmem:[%s2238_s1 + $0x428] sm:$0xff]  ;;  %v194_v41 = vld [vmem:[%s2238_s1 + $0x520] sm:$0xff]  ;;  %v180_v44 = vld [vmem:[%s2238_s1 + $0x4b0] sm:$0xff] }
  0x37   :  { %1255 = vmatpush3.bf16.msra.mxu1 %v1254_v37  ;;  %v1306_v37 = vpack.c.bf16 %v193_v29, %v192_v27  ;;  %v195_v43 = vld [vmem:[%s2238_s1 + $0x528] sm:$0xff]  ;;  %v181_v45 = vld [vmem:[%s2238_s1 + $0x4b8] sm:$0xff]  ;;  %v212_v46 = vld [vmem:[%s2238_s1 + $0x5b0] sm:$0xff] }
  0x38   :  { %1257 = vmatprep.subr.bf16.mxu1 %v1256_v42  ;;  %v1308_v42 = vpack.c.bf16 %v211_v33, %v210_v32  ;;  %v213_v47 = vld [vmem:[%s2238_s1 + $0x5b8] sm:$0xff]  ;;  %v164_v51 = vld [vmem:[%s2238_s1 + $0x430] sm:$0xff]  ;;  %v182_v56 = vld [vmem:[%s2238_s1 + $0x4c0] sm:$0xff] }
  0x39   :  { %1227 = vmatpush3.bf16.msra.mxu0 %v1226_v48  ;;  %v1278_v48 = vpack.c.bf16 %v163_v40, %v162_v39  ;;  %v165_v52 = vld [vmem:[%s2238_s1 + $0x438] sm:$0xff]  ;;  %v196_v53 = vld [vmem:[%s2238_s1 + $0x530] sm:$0xff]  ;;  %v183_v57 = vld [vmem:[%s2238_s1 + $0x4c8] sm:$0xff] }
  0x3a   :  { %1229 = vmatprep.subr.bf16.mxu0 %v1228_v50  ;;  %v1280_v50 = vpack.c.bf16 %v181_v45, %v180_v44  ;;  %v197_v55 = vld [vmem:[%s2238_s1 + $0x538] sm:$0xff]  ;;  %v214_v58 = vld [vmem:[%s2238_s1 + $0x5c0] sm:$0xff]  ;;  %v215_v59 = vld [vmem:[%s2238_s1 + $0x5c8] sm:$0xff] }
  0x3b   :  { %1259 = vmatpush3.bf16.msra.mxu1 %v1258_v49  ;;  %v1310_v49 = vpack.c.bf16 %v195_v43, %v194_v41  ;;  %v166_v63 = vld [vmem:[%s2238_s1 + $0x440] sm:$0xff]  ;;  %v167_v0 = vld [vmem:[%s2238_s1 + $0x448] sm:$0xff]  ;;  %v184_v4 = vld [vmem:[%s2238_s1 + $0x4d0] sm:$0xff] }
  0x3c   :  { %1261 = vmatprep.subr.bf16.mxu1 %v1260_v54  ;;  %v1312_v54 = vpack.c.bf16 %v213_v47, %v212_v46  ;;  %v198_v1 = vld [vmem:[%s2238_s1 + $0x540] sm:$0xff]  ;;  %v199_v3 = vld [vmem:[%s2238_s1 + $0x548] sm:$0xff]  ;;  %v185_v5 = vld [vmem:[%s2238_s1 + $0x4d8] sm:$0xff] }
  0x3d   :  { %1231 = vmatpush3.bf16.msra.mxu0 %v1230_v60  ;;  %v1282_v60 = vpack.c.bf16 %v165_v52, %v164_v51  ;;  %v216_v6 = vld [vmem:[%s2238_s1 + $0x5d0] sm:$0xff]  ;;  %v217_v7 = vld [vmem:[%s2238_s1 + $0x5d8] sm:$0xff]  ;;  %v186_v16 = vld [vmem:[%s2238_s1 + $0x4e0] sm:$0xff] }
  0x3e   :  { %1233 = vmatprep.subr.bf16.mxu0 %v1232_v62  ;;  %v1284_v62 = vpack.c.bf16 %v183_v57, %v182_v56  ;;  %v168_v11 = vld [vmem:[%s2238_s1 + $0x450] sm:$0xff]  ;;  %v169_v12 = vld [vmem:[%s2238_s1 + $0x458] sm:$0xff]  ;;  %v187_v17 = vld [vmem:[%s2238_s1 + $0x4e8] sm:$0xff] }
  0x3f   :  { %1263 = vmatpush3.bf16.msra.mxu1 %v1262_v61  ;;  %v1314_v61 = vpack.c.bf16 %v197_v55, %v196_v53  ;;  %v200_v13 = vld [vmem:[%s2238_s1 + $0x550] sm:$0xff]  ;;  %v201_v15 = vld [vmem:[%s2238_s1 + $0x558] sm:$0xff]  ;;  %v218_v18 = vld [vmem:[%s2238_s1 + $0x5e0] sm:$0xff] }
  0x40   :  { %1265 = vmatprep.subr.bf16.mxu1 %v1264_v2  ;;  %v1316_v2 = vpack.c.bf16 %v215_v59, %v214_v58  ;;  %v219_v19 = vld [vmem:[%s2238_s1 + $0x5e8] sm:$0xff]  ;;  %v202_v25 = vld [vmem:[%s2238_s1 + $0x560] sm:$0xff]  ;;  %v189_v29 = vld [vmem:[%s2238_s1 + $0x4f8] sm:$0xff] }
  0x41   :  { %1235 = vmatpush3.bf16.msra.mxu0 %v1234_v8  ;;  %v1286_v8 = vpack.c.bf16 %v167_v0, %v166_v63  ;;  %v1324_v26 = vpack.c.bf16 %v219_v19, %v218_v18  ;;  %v203_v27 = vld [vmem:[%s2238_s1 + $0x568] sm:$0xff]  ;;  %v220_v30 = vld [vmem:[%s2238_s1 + $0x5f0] sm:$0xff]  ;;  %v221_v31 = vld [vmem:[%s2238_s1 + $0x5f8] sm:$0xff] }
  0x42   :  { %1269 = vmatprep.subr.bf16.mxu0 %v1268_v10  ;;  %v1288_v10 = vpack.c.bf16 %v185_v5, %v184_v4  ;;  %v1326_v33 = vpack.c.bf16 %v203_v27, %v202_v25  ;;  %v205_v39 = vld [vmem:[%s2238_s1 + $0x578] sm:$0xff]  ;;  %v238_v40 = vld [vmem:[%s2238_s1 + $0x680] sm:$0xff]  ;;  %v239_v41 = vld [vmem:[%s2238_s1 + $0x688] sm:$0xff] }
  0x43   :  { %1267 = vmatpush3.bf16.msra.mxu1 %v1266_v9  ;;  %v1318_v9 = vpack.c.bf16 %v199_v3, %v198_v1  ;;  %v271_v43 = vld [vmem:[%s2238_s1 + $0x788] sm:$0xff]  ;;  %v1332_v46 = vpack.c.bf16 %v239_v41, %v238_v40  ;;  %v222_v47 = vld [vmem:[%s2238_s1 + $0x600] sm:$0xff]  ;;  %v240_v52 = vld [vmem:[%s2238_s1 + $0x690] sm:$0xff] }
  0x44   :  { %1301 = vmatprep.subr.bf16.mxu1 %v1300_v14  ;;  %498 = vmatmul.mubr.f32.vlgmr.msra.gmra.mrb[2].mxu0 %v18_v20  ;;  %v1320_v14 = vpack.c.bf16 %v217_v7, %v216_v6  ;;  %v1290_v20 = vpack.c.bf16 %v169_v12, %v168_v11  ;;  %v255_v51 = vld [vmem:[%s2238_s1 + $0x708] sm:$0xff]  ;;  %v241_v53 = vld [vmem:[%s2238_s1 + $0x698] sm:$0xff]  ;;  %v22_v56 = vld [vmem:[%s2239_s0 + $0x40] sm:$0xff] }
  0x45   :  { %1271 = vmatpush3.bf16.msra.mxu0 %v1270_v21  ;;  %637 = vmatprep.mubr.f32.mxu0 %v23_v34  ;;  %v1322_v21 = vpack.c.bf16 %v201_v15, %v200_v13  ;;  %v273_v55 = vld [vmem:[%s2238_s1 + $0x798] sm:$0xff]  ;;  %v24_v58 = vld [vmem:[%s2239_s0 + $0x50] sm:$0xff]  ;;  %v243_v3 = vld [vmem:[%s2238_s1 + $0x6a8] sm:$0xff] }
  0x46   :  { %568 = vmatmul.mubr.f32.vlgmr.msra.gmra.mrb[2].mxu1 %v20_v22  ;;  %1273 = vmatprep.subr.bf16.mxu0 %v1272_v24  ;;  %v1292_v22 = vpack.c.bf16 %v187_v17, %v186_v16  ;;  %v171_v24 = vld [vmem:[%s2238_s1 + $0x468] sm:$0xff]  ;;  %v256_v63 = vld [vmem:[%s2238_s1 + $0x710] sm:$0xff]  ;;  %v257_v1 = vld [vmem:[%s2238_s1 + $0x718] sm:$0xff] }
  0x47   :  { %1303 = vmatpush3.bf16.msra.mxu1 %v1302_v23  ;;  %707 = vmatprep.mubr.f32.mxu1 %v25_v36  ;;  %v170_v23 = vld [vmem:[%s2238_s1 + $0x460] sm:$0xff]  ;;  %v173_v36 = vld [vmem:[%s2238_s1 + $0x478] sm:$0xff]  ;;  %v275_v5 = vld [vmem:[%s2238_s1 + $0x7a8] sm:$0xff] }
  0x48   :  { %1305 = vmatprep.subr.bf16.mxu1 %v1304_v28  ;;  %v188_v28 = vld [vmem:[%s2238_s1 + $0x4f0] sm:$0xff]  ;;  %v1294_v32 = vpack.c.bf16 %v171_v24, %v170_v23  ;;  %v274_v4 = vld [vmem:[%s2238_s1 + $0x7a0] sm:$0xff]  ;;  %v27_v6 = vld [vmem:[%s2239_s0 + $0x68] sm:$0xff] }
  0x49   :  { %1275 = vmatpush3.bf16.msra.mxu0 %v1274_v35  ;;  %v1296_v34 = vpack.c.bf16 %v189_v29, %v188_v28  ;;  %v172_v35 = vld [vmem:[%s2238_s1 + $0x470] sm:$0xff]  ;;  %v226_v11 = vld [vmem:[%s2238_s1 + $0x620] sm:$0xff]  ;;  %v227_v12 = vld [vmem:[%s2238_s1 + $0x628] sm:$0xff] }
  0x4a   :  { %1277 = vmatprep.subr.bf16.mxu0 %v1276_v38  ;;  %v1328_v38 = vpack.c.bf16 %v221_v31, %v220_v30  ;;  %v1298_v44 = vpack.c.bf16 %v173_v36, %v172_v35  ;;  %v258_v13 = vld [vmem:[%s2238_s1 + $0x720] sm:$0xff]  ;;  %v259_v15 = vld [vmem:[%s2238_s1 + $0x728] sm:$0xff]  ;;  %v244_v16 = vld [vmem:[%s2238_s1 + $0x6b0] sm:$0xff] }
  0x4b   :  { %1307 = vmatpush3.bf16.msra.mxu1 %v1306_v37  ;;  %v204_v37 = vld [vmem:[%s2238_s1 + $0x570] sm:$0xff]  ;;  %v245_v17 = vld [vmem:[%s2238_s1 + $0x6b8] sm:$0xff]  ;;  %v246_v28 = vld [vmem:[%s2238_s1 + $0x6c0] sm:$0xff] }
  0x4c   :  { %1309 = vmatprep.subr.bf16.mxu1 %v1308_v42  ;;  %v270_v42 = vld [vmem:[%s2238_s1 + $0x780] sm:$0xff]  ;;  %v1330_v45 = vpack.c.bf16 %v205_v39, %v204_v37  ;;  %v276_v18 = vld [vmem:[%s2238_s1 + $0x7b0] sm:$0xff]  ;;  %v277_v19 = vld [vmem:[%s2238_s1 + $0x7b8] sm:$0xff] }
  0x4d   :  { %1279 = vmatpush3.bf16.msra.mxu0 %v1278_v48  ;;  %v223_v48 = vld [vmem:[%s2238_s1 + $0x608] sm:$0xff]  ;;  %v228_v23 = vld [vmem:[%s2238_s1 + $0x630] sm:$0xff]  ;;  %v229_v24 = vld [vmem:[%s2238_s1 + $0x638] sm:$0xff] }
  0x4e   :  { %1281 = vmatprep.subr.bf16.mxu0 %v1280_v50  ;;  %v1364_v50 = vpack.c.bf16 %v271_v43, %v270_v42  ;;  %v1334_v57 = vpack.c.bf16 %v223_v48, %v222_v47  ;;  %v260_v25 = vld [vmem:[%s2238_s1 + $0x730] sm:$0xff]  ;;  %v261_v27 = vld [vmem:[%s2238_s1 + $0x738] sm:$0xff]  ;;  %v247_v29 = vld [vmem:[%s2238_s1 + $0x6c8] sm:$0xff] }
  0x4f   :  { %1311 = vmatpush3.bf16.msra.mxu1 %v1310_v49  ;;  %v254_v49 = vld [vmem:[%s2238_s1 + $0x700] sm:$0xff]  ;;  %v279_v31 = vld [vmem:[%s2238_s1 + $0x7c8] sm:$0xff]  ;;  %v248_v40 = vld [vmem:[%s2238_s1 + $0x6d0] sm:$0xff] }
  0x50   :  { %1313 = vmatprep.subr.bf16.mxu1 %v1312_v54  ;;  %v272_v54 = vld [vmem:[%s2238_s1 + $0x790] sm:$0xff]  ;;  %v1366_v59 = vpack.c.bf16 %v255_v51, %v254_v49  ;;  %v278_v30 = vld [vmem:[%s2238_s1 + $0x7c0] sm:$0xff]  ;;  %v231_v36 = vld [vmem:[%s2238_s1 + $0x648] sm:$0xff] }
  0x51   :  { %1283 = vmatpush3.bf16.msra.mxu0 %v1282_v60  ;;  %v1336_v60 = vpack.c.bf16 %v241_v53, %v240_v52  ;;  %v1368_v0 = vpack.c.bf16 %v273_v55, %v272_v54  ;;  %v230_v35 = vld [vmem:[%s2238_s1 + $0x640] sm:$0xff]  ;;  %v263_v39 = vld [vmem:[%s2238_s1 + $0x748] sm:$0xff]  ;;  %v249_v41 = vld [vmem:[%s2238_s1 + $0x6d8] sm:$0xff] }
  0x52   :  { %1285 = vmatprep.subr.bf16.mxu0 %v1284_v62  ;;  %v225_v62 = vld [vmem:[%s2238_s1 + $0x618] sm:$0xff]  ;;  %v262_v37 = vld [vmem:[%s2238_s1 + $0x740] sm:$0xff]  ;;  %v280_v42 = vld [vmem:[%s2238_s1 + $0x7d0] sm:$0xff] }
  0x53   :  { %1315 = vmatpush3.bf16.msra.mxu1 %v1314_v61  ;;  %v224_v61 = vld [vmem:[%s2238_s1 + $0x610] sm:$0xff]  ;;  %v281_v43 = vld [vmem:[%s2238_s1 + $0x7d8] sm:$0xff]  ;;  %v250_v52 = vld [vmem:[%s2238_s1 + $0x6e0] sm:$0xff] }
  0x54   :  { %1317 = vmatprep.subr.bf16.mxu1 %v1316_v2  ;;  %v242_v2 = vld [vmem:[%s2238_s1 + $0x6a0] sm:$0xff]  ;;  %v1338_v7 = vpack.c.bf16 %v225_v62, %v224_v61  ;;  %v232_v47 = vld [vmem:[%s2238_s1 + $0x650] sm:$0xff]  ;;  %v233_v48 = vld [vmem:[%s2238_s1 + $0x658] sm:$0xff] }
  0x55   :  { %1287 = vmatpush3.bf16.msra.mxu0 %v1286_v8  ;;  %v29_v8 = vld [vmem:[%s2239_s0 + $0x78] sm:$0xff]  ;;  %v264_v49 = vld [vmem:[%s2238_s1 + $0x750] sm:$0xff]  ;;  %v251_v53 = vld [vmem:[%s2238_s1 + $0x6e8] sm:$0xff] }
  0x56   :  { %1289 = vmatprep.subr.bf16.mxu0 %v1288_v10  ;;  %v1340_v10 = vpack.c.bf16 %v243_v3, %v242_v2  ;;  %v265_v51 = vld [vmem:[%s2238_s1 + $0x758] sm:$0xff]  ;;  %v282_v54 = vld [vmem:[%s2238_s1 + $0x7e0] sm:$0xff]  ;;  %v283_v55 = vld [vmem:[%s2238_s1 + $0x7e8] sm:$0xff] }
  0x57   :  { %1319 = vmatpush3.bf16.msra.mxu1 %v1318_v9  ;;  %v1370_v9 = vpack.c.bf16 %v257_v1, %v256_v63  ;;  %v266_v61 = vld [vmem:[%s2238_s1 + $0x760] sm:$0xff]  ;;  %v1388_v62 = vpack.c.bf16 %v283_v55, %v282_v54  ;;  %v267_v63 = vld [vmem:[%s2238_s1 + $0x768] sm:$0xff]  ;;  %v253_v1 = vld [vmem:[%s2238_s1 + $0x6f8] sm:$0xff] }
  0x58   :  { %1321 = vmatprep.subr.bf16.mxu1 %v1320_v14  ;;  %v1372_v14 = vpack.c.bf16 %v275_v5, %v274_v4  ;;  %v284_v2 = vld [vmem:[%s2238_s1 + $0x7f0] sm:$0xff]  ;;  %v285_v3 = vld [vmem:[%s2238_s1 + $0x7f8] sm:$0xff]  ;;  %v1390_v5 = vpack.c.bf16 %v267_v63, %v266_v61 }
  0x59   :  { %1291 = vmatpush3.bf16.msra.mxu0 %v1290_v20  ;;  %v1342_v20 = vpack.c.bf16 %v227_v12, %v226_v11  ;;  %v269_v11 = vld [vmem:[%s2238_s1 + $0x778] sm:$0xff] }
  0x5a   :  { %1293 = vmatprep.subr.bf16.mxu0 %v1292_v22  ;;  %v1344_v22 = vpack.c.bf16 %v245_v17, %v244_v16  ;;  %v859_v17 = vld [vmem:[%s2240_s2] ss:$0 sm:$0xff] }
  0x5b   :  { %1323 = vmatpush3.bf16.msra.mxu1 %v1322_v21  ;;  %v1374_v21 = vpack.c.bf16 %v259_v15, %v258_v13  ;;  %v28_v15 = vld [vmem:[%s2239_s0 + $0x70] sm:$0xff] }
  0x5c   :  { %1325 = vmatprep.subr.bf16.mxu1 %v1324_v26  ;;  %v1376_v26 = vpack.c.bf16 %v277_v19, %v276_v18 }
  0x5d   :  { %1295 = vmatpush3.bf16.msra.mxu0 %v1294_v32  ;;  %v1346_v32 = vpack.c.bf16 %v229_v24, %v228_v23 }
  0x5e   :  { %1297 = vmatprep.subr.bf16.mxu0 %v1296_v34  ;;  %v1348_v34 = vpack.c.bf16 %v247_v29, %v246_v28 }
  0x5f   :  { %1327 = vmatpush3.bf16.msra.mxu1 %v1326_v33  ;;  %v1378_v33 = vpack.c.bf16 %v261_v27, %v260_v25 }
  0x60   :  { %1329 = vmatprep.subr.bf16.mxu1 %v1328_v38  ;;  %v1380_v38 = vpack.c.bf16 %v279_v31, %v278_v30 }
  0x61   :  { %1299 = vmatpush3.bf16.msra.mxu0 %v1298_v44  ;;  %v1350_v44 = vpack.c.bf16 %v231_v36, %v230_v35 }
  0x62   :  { %1333 = vmatprep.subr.bf16.mxu0 %v1332_v46  ;;  %v1352_v46 = vpack.c.bf16 %v249_v41, %v248_v40 }
  0x63   :  { %1331 = vmatpush3.bf16.msra.mxu1 %v1330_v45  ;;  %v1382_v45 = vpack.c.bf16 %v263_v39, %v262_v37 }
  0x64   :  { %1365 = vmatprep.subr.bf16.mxu1 %v1364_v50  ;;  %638 = vmatmul.mubr.f32.vlgmr.msra.gmra.mrb[4].mxu0 %v22_v56  ;;  %v1384_v50 = vpack.c.bf16 %v281_v43, %v280_v42  ;;  %v1354_v56 = vpack.c.bf16 %v233_v48, %v232_v47 }
  0x65   :  { %1335 = vmatpush3.bf16.msra.mxu0 %v1334_v57  ;;  %777 = vmatprep.mubr.f32.mxu0 %v27_v6  ;;  %v1386_v57 = vpack.c.bf16 %v265_v51, %v264_v49 }
  0x66   :  { %708 = vmatmul.mubr.f32.vlgmr.msra.gmra.mrb[4].mxu1 %v24_v58  ;;  %1337 = vmatprep.subr.bf16.mxu0 %v1336_v60  ;;  %v1356_v58 = vpack.c.bf16 %v251_v53, %v250_v52  ;;  %v235_v60 = vld [vmem:[%s2238_s1 + $0x668] sm:$0xff] }
  0x67   :  { %1367 = vmatpush3.bf16.msra.mxu1 %v1366_v59  ;;  %847 = vmatprep.mubr.f32.mxu1 %v29_v8  ;;  %v234_v59 = vld [vmem:[%s2238_s1 + $0x660] sm:$0xff]  ;;  %v237_v8 = vld [vmem:[%s2238_s1 + $0x678] sm:$0xff] }
  0x68   :  { %1369 = vmatprep.subr.bf16.mxu1 %v1368_v0  ;;  %v252_v0 = vld [vmem:[%s2238_s1 + $0x6f0] sm:$0xff]  ;;  %v1358_v4 = vpack.c.bf16 %v235_v60, %v234_v59 }
  0x69   :  { %1339 = vmatpush3.bf16.msra.mxu0 %v1338_v7  ;;  %v1360_v6 = vpack.c.bf16 %v253_v1, %v252_v0  ;;  %v236_v7 = vld [vmem:[%s2238_s1 + $0x670] sm:$0xff] }
  0x6a   :  { %1341 = vmatprep.subr.bf16.mxu0 %v1340_v10  ;;  %v268_v10 = vld [vmem:[%s2238_s1 + $0x770] sm:$0xff]  ;;  %v1362_v12 = vpack.c.bf16 %v237_v8, %v236_v7 }
  0x6b   :  { %1371 = vmatpush3.bf16.msra.mxu1 %v1370_v9  ;;  %v1392_v9 = vpack.c.bf16 %v285_v3, %v284_v2  ;;  %v1394_v13 = vpack.c.bf16 %v269_v11, %v268_v10 }
  0x6c   :  { %1373 = vmatprep.subr.bf16.mxu1 %v1372_v14  ;;  %v26_v14 = vld [vmem:[%s2239_s0 + $0x60] sm:$0xff] }
  0x6d   :  { %1343 = vmatpush3.bf16.msra.mxu0 %v1342_v20 }
  0x6e   :  { %1345 = vmatprep.subr.bf16.mxu0 %v1344_v22 }
  0x6f   :  { %1375 = vmatpush3.bf16.msra.mxu1 %v1374_v21 }
  0x70   :  { %1377 = vmatprep.subr.bf16.mxu1 %v1376_v26 }
  0x71   :  { %1347 = vmatpush3.bf16.msra.mxu0 %v1346_v32 }
  0x72   :  { %1349 = vmatprep.subr.bf16.mxu0 %v1348_v34 }
  0x73   :  { %1379 = vmatpush3.bf16.msra.mxu1 %v1378_v33 }
  0x74   :  { %1381 = vmatprep.subr.bf16.mxu1 %v1380_v38 }
  0x75   :  { %1351 = vmatpush3.bf16.msra.mxu0 %v1350_v44 }
  0x76   :  { %1353 = vmatprep.subr.bf16.mxu0 %v1352_v46 }
  0x77   :  { %1383 = vmatpush3.bf16.msra.mxu1 %v1382_v45 }
  0x78   :  { %1385 = vmatprep.subr.bf16.mxu1 %v1384_v50 }
  0x79   :  { %1355 = vmatpush3.bf16.msra.mxu0 %v1354_v56 }
  0x7a   :  { %1357 = vmatprep.subr.bf16.mxu0 %v1356_v58 }
  0x7b   :  { %1387 = vmatpush3.bf16.msra.mxu1 %v1386_v57 }
  0x7c   :  { %1389 = vmatprep.subr.bf16.mxu1 %v1388_v62 }
  0x7d   :  { %1359 = vmatpush3.bf16.msra.mxu0 %v1358_v4 }
  0x7e   :  { %1361 = vmatprep.subr.bf16.mxu0 %v1360_v6 }
  0x7f   :  { %1391 = vmatpush3.bf16.msra.mxu1 %v1390_v5 }
  0x80   :  { %1393 = vmatprep.subr.bf16.mxu1 %v1392_v9 }
  0x81   :  { %1363 = vmatpush3.bf16.msra.mxu0 %v1362_v12 }
  0x83   :  { %1395 = vmatpush3.bf16.msra.mxu1 %v1394_v13 }
  0x84   :  { %778 = vmatmul.mubr.f32.vlgmr.msra.gmra.mrb[6].mxu0 %v26_v14 }
  0x86   :  { %848 = vmatmul.mubr.f32.vlgmr.msra.gmra.mrb[6].mxu1 %v28_v15 }
  0xf7   :  { %v892_v16 = vpop.f32.mrb[0].mxu0 }
  0xf8   :  { %v893_v18 = vpop.f32.mrb[1].mxu0 }
  0xf9   :  { %v927_v19 = vpop.f32.mrb[0].mxu1  ;;  %v894_v20 = vadd.f32 %v893_v18, %v892_v16 }
  0xfa   :  { %v928_v21 = vpop.f32.mrb[1].mxu1 }
  0xfb   :  { %v929_v22 = vadd.f32 %v928_v21, %v927_v19  ;;  %v360_v23 = vadd.f32 %v894_v20, %v859_v17 }
  0xfd   :  { %v430_v24 = vadd.f32 %v929_v22, %v360_v23 }
 0x117   :  { %v962_v25 = vpop.f32.mrb[2].mxu0 }
 0x118   :  { %v963_v26 = vpop.f32.mrb[3].mxu0 }
 0x119   :  { %v997_v27 = vpop.f32.mrb[2].mxu1  ;;  %v964_v28 = vadd.f32 %v963_v26, %v962_v25 }
 0x11a   :  { %v998_v29 = vpop.f32.mrb[3].mxu1 }
 0x11b   :  { %v999_v30 = vadd.f32 %v998_v29, %v997_v27  ;;  %v500_v31 = vadd.f32 %v964_v28, %v430_v24 }
 0x11d   :  { %v570_v32 = vadd.f32 %v999_v30, %v500_v31 }
 0x137   :  { %v1032_v33 = vpop.f32.mrb[4].mxu0 }
 0x138   :  { %v1033_v34 = vpop.f32.mrb[5].mxu0 }
 0x139   :  { %v1067_v35 = vpop.f32.mrb[4].mxu1  ;;  %v1034_v36 = vadd.f32 %v1033_v34, %v1032_v33 }
 0x13a   :  { %v1068_v37 = vpop.f32.mrb[5].mxu1 }
 0x13b   :  { %v1069_v38 = vadd.f32 %v1068_v37, %v1067_v35  ;;  %v640_v39 = vadd.f32 %v1034_v36, %v570_v32 }
 0x13d   :  { %v710_v40 = vadd.f32 %v1069_v38, %v640_v39 }
 0x157   :  { %v1102_v41 = vpop.f32.mrb[6].mxu0 }
 0x158   :  { %v1103_v42 = vpop.f32.mrb[7].mxu0 }
 0x159   :  { %v1137_v43 = vpop.f32.mrb[6].mxu1  ;;  %v1104_v44 = vadd.f32 %v1103_v42, %v1102_v41 }
 0x15a   :  { %v1138_v45 = vpop.f32.mrb[7].mxu1 }
 0x15b   :  { %v1139_v46 = vadd.f32 %v1138_v45, %v1137_v43  ;;  %v780_v47 = vadd.f32 %v1104_v44, %v710_v40 }
 0x15d   :  { %v850_v48 = vadd.f32 %v1139_v46, %v780_v47 }
 0x15f   :  { %854 = vst.msk [vmem:[%s2241_s3] sm:$0xff] %vm853_vm0, %v850_v48 }

</bundles_post_ra>
